<compile_context>
chip_gen: v7x
topology: tpu7x:2x2x1
jax: 0.10.0
libtpu: 0.0.40
codegen_flags: <defaults>
</compile_context>

<pallas_src>
import functools

import jax
import jax.numpy as jnp
from jax.experimental import pallas as pl
from jax.experimental.pallas import tpu as pltpu

HIDDEN = 30        # logical hidden width (nn.Linear(n, 30))
HIDDEN_PAD = 32    # sublane-friendly padded hidden width


def _round_up(x, m):
    return (x + m - 1) // m * m


def _orthogonal(key, shape, gain=1.0, dtype=jnp.float32):
    """Deterministic orthogonal init (same semantics as nn.init.orthogonal_)."""
    rows, cols = shape
    flat_shape = (max(rows, cols), min(rows, cols))
    a = jax.random.normal(key, flat_shape, dtype)
    q, r = jnp.linalg.qr(a)
    d = jnp.where(jnp.diag(r) >= 0, 1.0, -1.0)   # sign fix; sgn(0) -> +1
    q = q * d[None, :]
    if rows < cols:
        q = q.T
    return (gain * q[:rows, :cols]).astype(dtype)


def init_actor_params(key, n_states, n_actions, std=1.0, bias_const=1e-6):
    """Logical-size f32 params; weights stored transposed (in, out) vs nn.Linear."""
    k1, k2, k3 = jax.random.split(key, 3)
    w1 = _orthogonal(k1, (HIDDEN, n_states), gain=std).T          # (n_states, 30)
    w2 = _orthogonal(k2, (HIDDEN, HIDDEN), gain=std).T            # (30, 30)
    w3 = _orthogonal(k3, (n_actions, HIDDEN), gain=std).T         # (30, n_actions)
    b1 = jnp.full((1, HIDDEN), bias_const, jnp.float32)
    b2 = jnp.full((1, HIDDEN), bias_const, jnp.float32)
    b3 = jnp.full((1, n_actions), bias_const, jnp.float32)
    return w1, b1, w2, b2, w3, b3


def pack_params_for_kernel(params):
    """Zero-pad hidden 30->32 and actions to a multiple of 8; weights -> bf16."""
    w1, b1, w2, b2, w3, b3 = params
    n_states = w1.shape[0]
    n_actions = w3.shape[1]
    a_pad = _round_up(n_actions, 8)   # small padded action width (NOT 128)

    def pad2(a, shape):
        return jnp.zeros(shape, a.dtype).at[: a.shape[0], : a.shape[1]].set(a)

    w1p = pad2(w1, (n_states, HIDDEN_PAD)).astype(jnp.bfloat16)
    w2p = pad2(w2, (HIDDEN_PAD, HIDDEN_PAD)).astype(jnp.bfloat16)
    w3p = pad2(w3, (HIDDEN_PAD, a_pad)).astype(jnp.bfloat16)
    b1p = pad2(b1, (1, HIDDEN_PAD))
    b2p = pad2(b2, (1, HIDDEN_PAD))
    b3p = pad2(b3, (1, a_pad))
    return w1p, b1p, w2p, b2p, w3p, b3p


def _actor_kernel(x_ref, w1_ref, b1_ref, w2_ref, b2_ref, w3_ref, b3_ref,
                  o_ref, *, max_action):
    # x arrives f32 from HBM; cast to bf16 in-kernel (hidden under DMA/store).
    x = x_ref[...].astype(jnp.bfloat16)
    h1 = jnp.dot(x, w1_ref[...], preferred_element_type=jnp.float32)
    h1 = jnp.maximum(h1 + b1_ref[...], 0.0)
    h2 = jnp.dot(h1.astype(jnp.bfloat16), w2_ref[...],
                 preferred_element_type=jnp.float32)
    h2 = jnp.maximum(h2 + b2_ref[...], 0.0)
    # Final layer, bias and tanh only on the (small) padded action width.
    a = jnp.dot(h2.astype(jnp.bfloat16), w3_ref[...],
                preferred_element_type=jnp.float32)
    a = a + b3_ref[...]
    o_ref[...] = (jnp.tanh(a) * max_action).astype(o_ref.dtype)


def actor_forward(state, kernel_params, max_action, n_actions, block_b=2048):
    """state: (B, n_states) float32 -> (B, n_actions) float32."""
    w1, b1, w2, b2, w3, b3 = kernel_params
    B, n_states = state.shape
    a_pad = w3.shape[1]

    # Batch tile: multiple of 8 (f32 input), capped at block_b rows, and capped
    # at ~half the batch so there are >= 2 grid steps for v7x's two TensorCores.
    half = max(8, _round_up(-(-B // 2), 8))
    tb = min(block_b, _round_up(B, 8), half)
    b_pad = _round_up(B, tb)
    nb = b_pad // tb

    x = state
    if b_pad != B:
        x = jnp.pad(x, ((0, b_pad - B), (0, 0)))   # last tile never writes garbage

    const = lambda shape: pl.BlockSpec(shape, lambda i: (0, 0))

    weight_bytes = sum(int(p.nbytes) for p in kernel_params)
    cost = pl.CostEstimate(
        flops=2 * b_pad * (n_states * HIDDEN_PAD
                           + HIDDEN_PAD * HIDDEN_PAD
                           + HIDDEN_PAD * a_pad),
        transcendentals=b_pad * a_pad,
        bytes_accessed=b_pad * n_states * 4 + weight_bytes + b_pad * a_pad * 4,
    )

    kernel = functools.partial(_actor_kernel, max_action=float(max_action))
    out = pl.pallas_call(
        kernel,
        out_shape=jax.ShapeDtypeStruct((b_pad, a_pad), jnp.float32),
        grid_spec=pltpu.PrefetchScalarGridSpec(
            num_scalar_prefetch=0,
            grid=(nb,),
            in_specs=[
                pl.BlockSpec((tb, n_states), lambda i: (i, 0)),   # streamed rows
                const(w1.shape), const(b1.shape),                  # VMEM-resident
                const(w2.shape), const(b2.shape),
                const(w3.shape), const(b3.shape),
            ],
            out_specs=pl.BlockSpec((tb, a_pad), lambda i: (i, 0)),
        ),
        compiler_params=pltpu.CompilerParams(
            dimension_semantics=("parallel",),          # shard batch over TCs on v7x
            vmem_limit_bytes=32 * 1024 * 1024,          # portable incl. v7x (64 MiB)
        ),
        cost_estimate=cost,
    )(x, w1, b1, w2, b2, w3, b3)
    return out[:B, :n_actions]


def actor_forward_ref(state, params, max_action):
    """Pure-JAX reference mirroring the kernel's mixed precision."""
    w1, b1, w2, b2, w3, b3 = params
    bf = jnp.bfloat16
    h1 = jnp.maximum(jnp.dot(state.astype(bf), w1.astype(bf),
                             preferred_element_type=jnp.float32) + b1, 0.0)
    h2 = jnp.maximum(jnp.dot(h1.astype(bf), w2.astype(bf),
                             preferred_element_type=jnp.float32) + b2, 0.0)
    a = jnp.dot(h2.astype(bf), w3.astype(bf),
                preferred_element_type=jnp.float32) + b3
    return jnp.tanh(a) * max_action


# TODO(synk): Adam optimizer step and checkpoint save/load from the PyTorch module
# are host-side training utilities, not part of the forward pass, so they are not
# implemented as Pallas kernels.

if __name__ == "__main__":
    n_states, n_actions, batch = 16, 4, 8
    max_action = 2.0

    key = jax.random.PRNGKey(0)
    k_param, k_state = jax.random.split(key)

    params = init_actor_params(k_param, n_states, n_actions)
    kernel_params = pack_params_for_kernel(params)
    state = jax.random.normal(k_state, (batch, n_states), jnp.float32)

    out = actor_forward(state, kernel_params, max_action, n_actions)
    out = jax.block_until_ready(out)

    ref = actor_forward_ref(state, params, max_action)
    assert out.shape == (batch, n_actions)
    assert jnp.allclose(out, ref, atol=2e-2, rtol=2e-2), "mismatch vs. pure-JAX reference"

    print("KERNEL_OK")
</pallas_src>

<mosaic_0001>
module attributes {stable_mosaic.version = 11 : i64} {
  func.func @_actor_kernel(%arg0: i32, %arg1: memref<8x16xf32, #tpu.memory_space<vmem>>, %arg2: memref<16x32xbf16, #tpu.memory_space<vmem>>, %arg3: memref<1x32xf32, #tpu.memory_space<vmem>>, %arg4: memref<32x32xbf16, #tpu.memory_space<vmem>>, %arg5: memref<1x32xf32, #tpu.memory_space<vmem>>, %arg6: memref<32x8xbf16, #tpu.memory_space<vmem>>, %arg7: memref<1x8xf32, #tpu.memory_space<vmem>>, %arg8: memref<8x8xf32, #tpu.memory_space<vmem>>) attributes {dimension_semantics = [#tpu.dimension_semantics<parallel>], iteration_bounds = array<i64: 1>, scalar_prefetch = 0 : i64, scratch_operands = 0 : i64, tpu.core_type = #tpu.core_type<tc>, window_params = [{transform_indices = @transform_0, window_bounds = array<i64: 8, 16>}, {pipeline_mode = #tpu.pipeline_mode<synchronous>, transform_indices = @transform_1, window_bounds = array<i64: 16, 32>}, {pipeline_mode = #tpu.pipeline_mode<synchronous>, transform_indices = @transform_2, window_bounds = array<i64: 1, 32>}, {pipeline_mode = #tpu.pipeline_mode<synchronous>, transform_indices = @transform_3, window_bounds = array<i64: 32, 32>}, {pipeline_mode = #tpu.pipeline_mode<synchronous>, transform_indices = @transform_4, window_bounds = array<i64: 1, 32>}, {pipeline_mode = #tpu.pipeline_mode<synchronous>, transform_indices = @transform_5, window_bounds = array<i64: 32, 8>}, {pipeline_mode = #tpu.pipeline_mode<synchronous>, transform_indices = @transform_6, window_bounds = array<i64: 1, 8>}, {transform_indices = @transform_7, window_bounds = array<i64: 8, 8>}]} {
    %c0 = arith.constant 0 : index
    %c0_0 = arith.constant 0 : index
    %0 = vector.load %arg1[%c0, %c0_0] : memref<8x16xf32, #tpu.memory_space<vmem>>, vector<8x16xf32>
    %1 = arith.truncf %0 : vector<8x16xf32> to vector<8x16xbf16>
    %c0_1 = arith.constant 0 : index
    %c0_2 = arith.constant 0 : index
    %2 = vector.load %arg2[%c0_1, %c0_2] : memref<16x32xbf16, #tpu.memory_space<vmem>>, vector<16x32xbf16>
    %cst = arith.constant dense<0.000000e+00> : vector<8x32xf32>
    %3 = tpu.matmul %1, %2, %cst {dimension_numbers = #tpu.dot_dimension_numbers<[1], [0], [0], [1], [0, 0, 1, 1], [], []>} : vector<8x16xbf16>, vector<16x32xbf16>, vector<8x32xf32> -> vector<8x32xf32>
    %c0_3 = arith.constant 0 : index
    %c0_4 = arith.constant 0 : index
    %4 = vector.load %arg3[%c0_3, %c0_4] : memref<1x32xf32, #tpu.memory_space<vmem>>, vector<1x32xf32>
    %5 = vector.broadcast %4 : vector<1x32xf32> to vector<8x32xf32>
    %6 = arith.addf %3, %5 : vector<8x32xf32>
    %cst_5 = arith.constant 0.000000e+00 : f32
    %7 = vector.broadcast %cst_5 : f32 to vector<8x32xf32>
    %8 = arith.maximumf %6, %7 : vector<8x32xf32>
    %9 = arith.truncf %8 : vector<8x32xf32> to vector<8x32xbf16>
    %c0_6 = arith.constant 0 : index
    %c0_7 = arith.constant 0 : index
    %10 = vector.load %arg4[%c0_6, %c0_7] : memref<32x32xbf16, #tpu.memory_space<vmem>>, vector<32x32xbf16>
    %cst_8 = arith.constant dense<0.000000e+00> : vector<8x32xf32>
    %11 = tpu.matmul %9, %10, %cst_8 {dimension_numbers = #tpu.dot_dimension_numbers<[1], [0], [0], [1], [0, 0, 1, 1], [], []>} : vector<8x32xbf16>, vector<32x32xbf16>, vector<8x32xf32> -> vector<8x32xf32>
    %c0_9 = arith.constant 0 : index
    %c0_10 = arith.constant 0 : index
    %12 = vector.load %arg5[%c0_9, %c0_10] : memref<1x32xf32, #tpu.memory_space<vmem>>, vector<1x32xf32>
    %13 = vector.broadcast %12 : vector<1x32xf32> to vector<8x32xf32>
    %14 = arith.addf %11, %13 : vector<8x32xf32>
    %cst_11 = arith.constant 0.000000e+00 : f32
    %15 = vector.broadcast %cst_11 : f32 to vector<8x32xf32>
    %16 = arith.maximumf %14, %15 : vector<8x32xf32>
    %17 = arith.truncf %16 : vector<8x32xf32> to vector<8x32xbf16>
    %c0_12 = arith.constant 0 : index
    %c0_13 = arith.constant 0 : index
    %18 = vector.load %arg6[%c0_12, %c0_13] : memref<32x8xbf16, #tpu.memory_space<vmem>>, vector<32x8xbf16>
    %cst_14 = arith.constant dense<0.000000e+00> : vector<8x8xf32>
    %19 = tpu.matmul %17, %18, %cst_14 {dimension_numbers = #tpu.dot_dimension_numbers<[1], [0], [0], [1], [0, 0, 1, 1], [], []>} : vector<8x32xbf16>, vector<32x8xbf16>, vector<8x8xf32> -> vector<8x8xf32>
    %c0_15 = arith.constant 0 : index
    %c0_16 = arith.constant 0 : index
    %20 = vector.load %arg7[%c0_15, %c0_16] : memref<1x8xf32, #tpu.memory_space<vmem>>, vector<1x8xf32>
    %21 = vector.broadcast %20 : vector<1x8xf32> to vector<8x8xf32>
    %22 = arith.addf %19, %21 : vector<8x8xf32>
    %23 = math.tanh %22 : vector<8x8xf32>
    %cst_17 = arith.constant 2.000000e+00 : f32
    %24 = vector.broadcast %cst_17 : f32 to vector<8x8xf32>
    %25 = arith.mulf %23, %24 : vector<8x8xf32>
    %c0_18 = arith.constant 0 : index
    %c0_19 = arith.constant 0 : index
    %26 = vector.load %arg8[%c0_18, %c0_19] : memref<8x8xf32, #tpu.memory_space<vmem>>, vector<8x8xf32>
    tpu.vector_store %arg8[%c0_18, %c0_19], %25 {strides = array<i32>} : memref<8x8xf32, #tpu.memory_space<vmem>>, vector<8x8xf32>,
    return
  }
  func.func @transform_0(%arg0: i32) -> (i32, i32) {
    %c0_i32 = arith.constant 0 : i32
    %c0_i32_0 = arith.constant 0 : i32
    return %arg0, %c0_i32 : i32, i32
  }
  func.func @transform_1(%arg0: i32) -> (i32, i32) {
    %c0_i32 = arith.constant 0 : i32
    %c0_i32_0 = arith.constant 0 : i32
    %c0_i32_1 = arith.constant 0 : i32
    return %c0_i32, %c0_i32_0 : i32, i32
  }
  func.func @transform_2(%arg0: i32) -> (i32, i32) {
    %c0_i32 = arith.constant 0 : i32
    %c0_i32_0 = arith.constant 0 : i32
    %c0_i32_1 = arith.constant 0 : i32
    return %c0_i32, %c0_i32_0 : i32, i32
  }
  func.func @transform_3(%arg0: i32) -> (i32, i32) {
    %c0_i32 = arith.constant 0 : i32
    %c0_i32_0 = arith.constant 0 : i32
    %c0_i32_1 = arith.constant 0 : i32
    return %c0_i32, %c0_i32_0 : i32, i32
  }
  func.func @transform_4(%arg0: i32) -> (i32, i32) {
    %c0_i32 = arith.constant 0 : i32
    %c0_i32_0 = arith.constant 0 : i32
    %c0_i32_1 = arith.constant 0 : i32
    return %c0_i32, %c0_i32_0 : i32, i32
  }
  func.func @transform_5(%arg0: i32) -> (i32, i32) {
    %c0_i32 = arith.constant 0 : i32
    %c0_i32_0 = arith.constant 0 : i32
    %c0_i32_1 = arith.constant 0 : i32
    return %c0_i32, %c0_i32_0 : i32, i32
  }
  func.func @transform_6(%arg0: i32) -> (i32, i32) {
    %c0_i32 = arith.constant 0 : i32
    %c0_i32_0 = arith.constant 0 : i32
    %c0_i32_1 = arith.constant 0 : i32
    return %c0_i32, %c0_i32_0 : i32, i32
  }
  func.func @transform_7(%arg0: i32) -> (i32, i32) {
    %c0_i32 = arith.constant 0 : i32
    %c0_i32_0 = arith.constant 0 : i32
    return %arg0, %c0_i32 : i32, i32
  }
}

</mosaic_0001>

<bundles_post_ra>
// kernel: tpu_custom_call.1
= control target key start
LH: loop header
LB: loop body
LE: loop exit
PB: predicated region body
PF: predicated region fallthrough
CT: control target
= control target key end

     0   :  { %12 = vsyncpa [#allocation3], 0  ;;  %s455_s0 = inlined_call_operand.vmem [shape: f32[8,16], index: 0, kind: input, shape index: {}]   ;;  %s456_s1 = inlined_call_operand.hbm [shape: bf16[16,32], index: 1, kind: input, shape index: {}]   ;;  %s457_s2 = inlined_call_operand.vmem [shape: f32[1,32], index: 2, kind: input, shape index: {}]   ;;  %s458_s3 = inlined_call_operand.vmem [shape: bf16[32,32], index: 3, kind: input, shape index: {}]   ;;  %s459_s4 = inlined_call_operand.vmem [shape: f32[1,32], index: 4, kind: input, shape index: {}]   ;;  %s460_s5 = inlined_call_operand.vmem [shape: bf16[32,8], index: 5, kind: input, shape index: {}]   ;;  %s461_s6 = inlined_call_operand.vmem [shape: f32[1,8], index: 6, kind: input, shape index: {}]   ;;  %s462_s7 = inlined_call_operand.hbm [shape: f32[8,8], index: 7, kind: output, shape index: {}]  }
   0x1   :  { %13 = vsyncpa [#allocation4], 0  ;;  %s361_s24 = smov [#allocation2]   ;;  %s313_s28 = scalar_lea.hbm %s456_s1, 128 }
   0x2   :  { %s21_s25 = sshll.u32 %s361_s24, 4  ;;  %p314_p0 = scmp.ne.s32.totalorder %s456_s1, %s313_s28  ;;  %s22_s25 = int_to_ptr.vmem [resolvable:$true] %s21_s25 }
   0x3   :  { %p317_p1 = scmp.lt.u32.totalorder %s313_s28, %s456_s1 }
   0x5   :  { %p319_p2 = pnand %p317_p1, %p314_p0 }
   0x7   :  { %322 = shalt.err (!%p319_p2)
}
   0x8   :  { %s323_s10 = scalar_lea.vmem %s22_s25, 128  ;;  %p328_p4 = scmp.lt.s32.totalorder %s22_s25, %s22_s25 }
   0x9   :  { %p324_p3 = scmp.ne.s32.totalorder %s22_s25, %s323_s10  ;;  %p329_p5 = scmp.lt.s32.totalorder %s323_s10, %s323_s10 }
   0xb   :  { %p330_p6 = por %p329_p5, %p328_p4 }
   0xd   :  { %p331_p7 = pnand %p330_p6, %p324_p3 }
   0xf   :  { %334 = shalt.err (!%p331_p7)
}
  0x10   :  { %s362_s11 = smov 64   ;;  %s363_s12 = smov 4  }
  0x11   :  { %27 = dma.hbm_to_vmem [thread:$0]  %s456_s1, 128, %s22_s25, [#allocation3], %s362_s11, %s362_s11, %s363_s12  }
  0x12   :  { %357 = dma.done.wait [#allocation3], 128  }
  0x13   :  { %358 = vsyncadd [#allocation3], 4294967168  ;;  %v364_v0 = vmov 0.0   ;;  %vm365_vm0 = vmmov 0   ;;  %v306_v1 = vld [vmem:[#allocation2] sm:$0xff]   ;;  %vm59_vm1 = vcmask 130048  }
  0x14   :  { %278 = vmatprep.subr.bf16.mxu0 %v364_v0  ;;  %280 = vmatprep.mubr.msk.bf16.mxu0 %vm365_vm0, %v364_v0  ;;  %v42_v2 = vld [vmem:[%s455_s0] sm:$0xff]  ;;  %v308_v5 = vld [vmem:[%s458_s3 + $0x8] sm:$0xff]   ;;  %vm128_vm2 = vcmask 261120   ;;  %vm242_vm3 = vcmask 64512  }
  0x15   :  { %284 = vmatprep.subr.bf16.mxu1 %v364_v0  ;;  %288 = vmatprep.mubr.msk.bf16.mxu1 %vm365_vm0, %v364_v0  ;;  %v43_v3 = vpack.c.bf16 %v42_v2, %v42_v2  ;;  %v307_v4 = vld [vmem:[%s458_s3] sm:$0xff]   ;;  %v310_v15 = vld [vmem:[%s460_s5 + $0x8] sm:$0xff]  }
  0x16   :  { %279 = vmatpush3.bf16.msra.mxu0 %v306_v1  ;;  %285 = vmatpush3.bf16.msra.mxu1 %v307_v4  ;;  %v309_v6 = vld [vmem:[%s460_s5] sm:$0xff]   ;;  %s366_s5 = smov [#allocation5]  }
  0x17   :  { %292 = vmatprep.subr.bf16.mxu0 %v364_v0  ;;  %286 = vmatprep.subr.bf16.mxu1 %v364_v0  ;;  %v259_v7 = vld [vmem:[%s457_s2] ss:$0 sm:$0xff] }
  0x18   :  { %v262_v16 = vld [vmem:[%s459_s4] ss:$0 sm:$0xff]  ;;  %s250_s4 = sshll.u32 %s366_s5, 4  ;;  %s251_s4 = int_to_ptr.vmem [resolvable:$true] %s250_s4 }
  0x19   :  { %281 = vmatmul.mubr.msk.bf16.vlgmr.msra.gmra.mrb[0].mxu0 %vm59_vm1, %v43_v3  ;;  %v266_v24 = vld [vmem:[%s461_s6] ss:$0 sm:$0xff]  ;;  %s335_s27 = scalar_lea.vmem %s251_s4, 128  ;;  %p340_p9 = scmp.lt.s32.totalorder %s251_s4, %s251_s4 }
  0x1a   :  { %296 = vmatprep.mubr.msk.bf16.mxu0 %vm365_vm0, %v364_v0  ;;  %287 = vmatpush3.bf16.msra.mxu1 %v308_v5  ;;  %p336_p8 = scmp.ne.s32.totalorder %s251_s4, %s335_s27  ;;  %p341_p10 = scmp.lt.s32.totalorder %s335_s27, %s335_s27 }
  0x1b   :  { %293 = vmatpush3.bf16.msra.mxu0 %v309_v6 }
  0x1c   :  { %294 = vmatprep.subr.bf16.mxu0 %v364_v0  ;;  %p342_p11 = por %p341_p10, %p340_p9 }
  0x1e   :  { %p343_p12 = pnand %p342_p11, %p336_p8 }
  0x1f   :  { %295 = vmatpush3.bf16.msra.mxu0 %v310_v15 }
  0xec   :  { %v97_v8 = vpop.f32.mrb[0].mxu0 }
  0xed   :  { %v98_v9 = vadd.f32 %v259_v7, %v97_v8  ;;  %v282_v10 = vpop.f32.mrb[1].mxu0 }
  0xee   :  { %v100_v11 = vpop.f32.mrb[2].mxu0 }
  0xef   :  { %v103_v12 = vmax.f32 %v98_v9, 0.0  ;;  %v283_v13 = vpop.f32.mrb[3].mxu0 }
  0xf1   :  { %v104_v14 = vpack.c.bf16 %v103_v12, %v103_v12 }
  0xf3   :  { %289 = vmatmul.mubr.msk.bf16.vlgmr.msra.gmra.mrb[0].mxu1 %vm128_vm2, %v104_v14 }
 0x1c6   :  { %v166_v17 = vpop.f32.mrb[0].mxu1 }
 0x1c7   :  { %v167_v18 = vadd.f32 %v262_v16, %v166_v17  ;;  %v290_v19 = vpop.f32.mrb[1].mxu1 }
 0x1c8   :  { %v169_v20 = vpop.f32.mrb[2].mxu1 }
 0x1c9   :  { %v172_v21 = vmax.f32 %v167_v18, 0.0  ;;  %v291_v22 = vpop.f32.mrb[3].mxu1 }
 0x1cb   :  { %v173_v23 = vpack.c.bf16 %v172_v21, %v172_v21 }
 0x1cd   :  { %297 = vmatmul.mubr.msk.bf16.vlgmr.msra.gmra.mrb[4].mxu0 %vm128_vm2, %v173_v23 }
 0x2a0   :  { %v234_v25 = vpop.f32.mrb[4].mxu0 }
 0x2a1   :  { %v235_v26 = vadd.f32 %v266_v24, %v234_v25  ;;  %v298_v27 = vpop.f32.mrb[5].mxu0 }
 0x2a2   :  { %v237_v28 = vpop.f32.mrb[6].mxu0 }
 0x2a3   :  { %311 = vtanh.f32 %v235_v26  ;;  %v299_v29 = vpop.f32.mrb[7].mxu0 }
 0x2ad   :  { %v312_v30 = vpop.eup %311 }
 0x2ae   :  { %v241_v31 = vmul.f32 2.0, %v312_v30 }
 0x2b0   :  { %243 = vst.msk [vmem:[#allocation5] sm:$0xff] %vm242_vm3, %v241_v31 }
 0x2b1   :  { %346 = shalt.err (!%p343_p12)
}
 0x2b2   :  { %s347_s29 = scalar_lea.hbm %s462_s7, 128 }
 0x2b3   :  { %p348_p13 = scmp.ne.s32.totalorder %s462_s7, %s347_s29  ;;  %p351_p0 = scmp.lt.u32.totalorder %s347_s29, %s462_s7 }
 0x2b5   :  { %p353_p1 = pnand %p351_p0, %p348_p13 }
 0x2b7   :  { %356 = shalt.err (!%p353_p1)
}
 0x2b8   :  { %253 = dma.vmem_to_hbm [thread:$0]  %s251_s4, 128, %s462_s7, [#allocation4]  }
 0x2b9   :  { %359 = dma.done.wait [#allocation4], 128  }
 0x2ba   :  { %360 = vsyncadd [#allocation4], 4294967168 }
 0x2bb   :  { %257 = vsyncpa [#allocation3], 1 }
 0x2bc   :  { %258 = vsyncpa [#allocation4], 1 }

</bundles_post_ra>
